<compile_context>
chip_gen: v7x
topology: tpu7x:2x2x1
jax: 0.10.0
libtpu: 0.0.40
codegen_flags: <defaults>
</compile_context>

<pallas_src>
import jax
import jax.numpy as jnp
from jax.experimental import pallas as pl
from jax.experimental.pallas import tpu as pltpu


# ---------------------------------------------------------------------------
# Problem sizes (small, deterministic)
# ---------------------------------------------------------------------------
T = 8          # number of video frames ("seq")
C = 4          # input channels
H = W = 16     # spatial size
PATCH = 4      # patch size -> P = (H/PATCH)*(W/PATCH) patches per frame
P = (H // PATCH) * (W // PATCH)          # 16 patch tokens per frame
DP = C * PATCH * PATCH                   # 64 raw patch dim
D = 32         # hidden dim
L = 8          # number of perceiver latent queries (vision tokens per frame)
ROWS = T * P                             # 128 patch rows total


# ---------------------------------------------------------------------------
# Fused kernel: folded patch-embed + perceiver cross-attention + mean-pool
#               + prompt scoring
# ---------------------------------------------------------------------------
def tfvsn_fused_kernel(patch_ref, ws_ref, wvo_ref, bvo_ref, prompt_ref,
                       feat_out_ref, score_out_ref):
    patches = patch_ref[...]                                          # (T*P, DP)

    # Attention logits in one MXU pass: W_s already folds Wp, Wk, q and the
    # 1/sqrt(D) scale.  (The folded bias is constant over the patch axis and
    # cancels in the softmax, so it is dropped.)
    s2 = jnp.dot(patches, ws_ref[...],
                 preferred_element_type=jnp.float32)                  # (T*P, L)

    # Wo-folded values in one MXU pass.
    vo = jnp.dot(patches, wvo_ref[...],
                 preferred_element_type=jnp.float32) + bvo_ref[...]   # (T*P, D)

    # Numerically stable softmax over the patch axis (per frame, per latent).
    # reshape only splits the sublane axis -> layout preserving.
    s3 = s2.reshape(T, P, L)
    s_max = jnp.max(s3, axis=1, keepdims=True)                        # (T, 1, L)
    e = jnp.exp(s3 - s_max)
    denom = jnp.sum(e, axis=1, keepdims=True)                         # (T, 1, L)
    attn = e / denom                                                  # (T, P, L)

    # == torch.mean(vision_feature, dim=0): mean over latent tokens.
    # Mean is linear, so pool the attention weights first.
    pooled = jnp.mean(attn, axis=-1, keepdims=True)                   # (T, P, 1)

    # Weighted sum of (Wo-folded) values: VPU broadcast-mul + XLU segmented sum.
    vo3 = vo.reshape(T, P, D)                                         # (T, P, D)
    frame_feats = jnp.sum(pooled * vo3, axis=1)                       # (T, D)

    # Prompt scoring fused in (stand-in for _get_scores_from_llm_output):
    # avoids a second dispatch + HBM round-trip of the frame features.
    score_out_ref[...] = jnp.sum(frame_feats * prompt_ref[...],
                                 axis=-1, keepdims=True)              # (T, 1)

    feat_out_ref[...] = frame_feats.astype(feat_out_ref.dtype)        # (T, D)


def tfvsn_fused(patches, w_s, w_vo, b_vo, prompt):
    """patches: [T*P, DP]; returns (frame features [T, D], scores [T, 1])."""
    return pl.pallas_call(
        tfvsn_fused_kernel,
        out_shape=(jax.ShapeDtypeStruct((T, D), jnp.float32),
                   jax.ShapeDtypeStruct((T, 1), jnp.float32)),
        grid=(1,),
        in_specs=[
            pl.BlockSpec((ROWS, DP), lambda i: (0, 0)),
            pl.BlockSpec((DP, L), lambda i: (0, 0)),
            pl.BlockSpec((DP, D), lambda i: (0, 0)),
            pl.BlockSpec((1, D), lambda i: (0, 0)),
            pl.BlockSpec((1, D), lambda i: (0, 0)),
        ],
        out_specs=(
            pl.BlockSpec((T, D), lambda i: (0, 0)),
            pl.BlockSpec((T, 1), lambda i: (0, 0)),
        ),
        compiler_params=pltpu.CompilerParams(
            dimension_semantics=("arbitrary",)),
    )(patches, w_s, w_vo, b_vo, prompt)


# ---------------------------------------------------------------------------
# Glue: NCHW frames -> patch tokens, parameter construction / folding, forward
# ---------------------------------------------------------------------------
def extract_patches_nchw(x):
    # x: [T, C, H, W]  ->  [T*P, C*PATCH*PATCH]
    t, c, h, w = x.shape
    x = x.reshape(t, c, h // PATCH, PATCH, w // PATCH, PATCH)
    x = x.transpose(0, 2, 4, 1, 3, 5)            # [T, H/p, W/p, C, p, p]
    return x.reshape(t * P, c * PATCH * PATCH)


def make_params(key):
    ks = jax.random.split(key, 8)
    scale = 0.05
    return {
        "w_patch": scale * jax.random.normal(ks[0], (DP, D), jnp.float32),
        "b_patch": scale * jax.random.normal(ks[1], (1, D), jnp.float32),
        "latents": scale * jax.random.normal(ks[2], (L, D), jnp.float32),
        "wq": scale * jax.random.normal(ks[3], (D, D), jnp.float32),
        "wk": scale * jax.random.normal(ks[4], (D, D), jnp.float32),
        "wv": scale * jax.random.normal(ks[5], (D, D), jnp.float32),
        "wo": scale * jax.random.normal(ks[6], (D, D), jnp.float32),
        "prompt": scale * jax.random.normal(ks[7], (1, D), jnp.float32),
    }


def fold_params(params):
    """One-time algebraic folding of the parameter-only matmuls (exact):
       (x @ Wp + b) @ Wk @ q^T / sqrt(D) == x @ W_s  (+ const that cancels in softmax)
       (x @ Wp + b) @ Wv @ Wo           == x @ W_vo + b_vo
    Run once per parameter set, NOT per forward call."""
    q = params["latents"] @ params["wq"]                               # (L, D)
    scale = 1.0 / jnp.sqrt(jnp.float32(D))
    w_s = (params["w_patch"] @ params["wk"]) @ q.T * scale             # (DP, L)
    wvwo = params["wv"] @ params["wo"]                                 # (D, D)
    w_vo = params["w_patch"] @ wvwo                                    # (DP, D)
    b_vo = params["b_patch"] @ wvwo                                    # (1, D)
    return {"w_s": w_s, "w_vo": w_vo, "b_vo": b_vo, "prompt": params["prompt"]}


@jax.jit
def forward(video_frames, folded):
    """video_frames: [T, C, H, W] (NCHW, like PyTorch pixel_values).
    Returns (frame_features [T, D], scores [T])."""
    patches = extract_patches_nchw(video_frames)                       # [T*P, DP]
    frame_feats, scores = tfvsn_fused(patches, folded["w_s"], folded["w_vo"],
                                      folded["b_vo"], folded["prompt"])
    return frame_feats, scores[:, 0]


def forward_reference(video_frames, params):
    patches = extract_patches_nchw(video_frames)
    feats = (patches @ params["w_patch"] + params["b_patch"]).reshape(T, P, D)
    q = params["latents"] @ params["wq"]                               # (L, D)
    k = jnp.einsum("tpd,de->tpe", feats, params["wk"])
    v = jnp.einsum("tpd,de->tpe", feats, params["wv"])
    s = jnp.einsum("ld,tpd->tlp", q, k) / jnp.sqrt(jnp.float32(D))
    attn = jax.nn.softmax(s, axis=-1)
    tok = jnp.einsum("tlp,tpd->tld", attn, v)
    tok = jnp.einsum("tld,de->tle", tok, params["wo"])
    frame_feats = jnp.mean(tok, axis=1)                                # (T, D)
    scores = jnp.sum(frame_feats * params["prompt"], axis=-1)          # (T,)
    return frame_feats, scores


if __name__ == "__main__":
    key = jax.random.PRNGKey(0)
    k_data, k_params = jax.random.split(key)
    video = jax.random.normal(k_data, (T, C, H, W), jnp.float32)       # NCHW
    params = make_params(k_params)
    folded = fold_params(params)     # folded once, reused across forward calls

    frame_feats, scores = forward(video, folded)
    jax.block_until_ready((frame_feats, scores))

    ref_feats, ref_scores = forward_reference(video, params)
    assert jnp.allclose(frame_feats, ref_feats, atol=1e-4, rtol=1e-4)
    assert jnp.allclose(scores, ref_scores, atol=1e-4, rtol=1e-4)

    print("KERNEL_OK")
</pallas_src>

<mosaic_0001>
module attributes {stable_mosaic.version = 11 : i64} {
  func.func @tfvsn_fused_kernel(%arg0: i32, %arg1: memref<128x64xf32, #tpu.memory_space<vmem>>, %arg2: memref<64x8xf32, #tpu.memory_space<vmem>>, %arg3: memref<64x32xf32, #tpu.memory_space<vmem>>, %arg4: memref<1x32xf32, #tpu.memory_space<vmem>>, %arg5: memref<1x32xf32, #tpu.memory_space<vmem>>, %arg6: memref<8x32xf32, #tpu.memory_space<vmem>>, %arg7: memref<8x1xf32, #tpu.memory_space<vmem>>) attributes {dimension_semantics = [#tpu.dimension_semantics<arbitrary>], iteration_bounds = array<i64: 1>, scalar_prefetch = 0 : i64, scratch_operands = 0 : i64, tpu.core_type = #tpu.core_type<tc>, window_params = [{pipeline_mode = #tpu.pipeline_mode<synchronous>, transform_indices = @transform_0, window_bounds = array<i64: 128, 64>}, {pipeline_mode = #tpu.pipeline_mode<synchronous>, transform_indices = @transform_1, window_bounds = array<i64: 64, 8>}, {pipeline_mode = #tpu.pipeline_mode<synchronous>, transform_indices = @transform_2, window_bounds = array<i64: 64, 32>}, {pipeline_mode = #tpu.pipeline_mode<synchronous>, transform_indices = @transform_3, window_bounds = array<i64: 1, 32>}, {pipeline_mode = #tpu.pipeline_mode<synchronous>, transform_indices = @transform_4, window_bounds = array<i64: 1, 32>}, {pipeline_mode = #tpu.pipeline_mode<synchronous>, transform_indices = @transform_5, window_bounds = array<i64: 8, 32>}, {pipeline_mode = #tpu.pipeline_mode<synchronous>, transform_indices = @transform_6, window_bounds = array<i64: 8, 1>}]} {
    %c0 = arith.constant 0 : index
    %c0_0 = arith.constant 0 : index
    %0 = vector.load %arg1[%c0, %c0_0] : memref<128x64xf32, #tpu.memory_space<vmem>>, vector<128x64xf32>
    %c0_1 = arith.constant 0 : index
    %c0_2 = arith.constant 0 : index
    %1 = vector.load %arg2[%c0_1, %c0_2] : memref<64x8xf32, #tpu.memory_space<vmem>>, vector<64x8xf32>
    %cst = arith.constant dense<0.000000e+00> : vector<128x8xf32>
    %2 = tpu.matmul %0, %1, %cst {dimension_numbers = #tpu.dot_dimension_numbers<[1], [0], [0], [1], [0, 0, 1, 1], [], []>} : vector<128x64xf32>, vector<64x8xf32>, vector<128x8xf32> -> vector<128x8xf32>
    %c0_3 = arith.constant 0 : index
    %c0_4 = arith.constant 0 : index
    %3 = vector.load %arg3[%c0_3, %c0_4] : memref<64x32xf32, #tpu.memory_space<vmem>>, vector<64x32xf32>
    %cst_5 = arith.constant dense<0.000000e+00> : vector<128x32xf32>
    %4 = tpu.matmul %0, %3, %cst_5 {dimension_numbers = #tpu.dot_dimension_numbers<[1], [0], [0], [1], [0, 0, 1, 1], [], []>} : vector<128x64xf32>, vector<64x32xf32>, vector<128x32xf32> -> vector<128x32xf32>
    %c0_6 = arith.constant 0 : index
    %c0_7 = arith.constant 0 : index
    %5 = vector.load %arg4[%c0_6, %c0_7] : memref<1x32xf32, #tpu.memory_space<vmem>>, vector<1x32xf32>
    %6 = vector.broadcast %5 : vector<1x32xf32> to vector<128x32xf32>
    %7 = arith.addf %4, %6 : vector<128x32xf32>
    %8 = vector.shape_cast %2 : vector<128x8xf32> to vector<8x16x8xf32>
    %cst_8 = arith.constant dense<0xFF800000> : vector<8x8xf32>
    %9 = vector.multi_reduction <maximumf>, %8, %cst_8 [1] : vector<8x16x8xf32> to vector<8x8xf32>
    %10 = vector.shape_cast %9 : vector<8x8xf32> to vector<8x1x8xf32>
    %11 = vector.broadcast %10 : vector<8x1x8xf32> to vector<8x16x8xf32>
    %12 = arith.subf %8, %11 : vector<8x16x8xf32>
    %13 = math.exp %12 : vector<8x16x8xf32>
    %cst_9 = arith.constant dense<0.000000e+00> : vector<8x8xf32>
    %14 = vector.multi_reduction <add>, %13, %cst_9 [1] : vector<8x16x8xf32> to vector<8x8xf32>
    %15 = vector.shape_cast %14 : vector<8x8xf32> to vector<8x1x8xf32>
    %16 = vector.broadcast %15 : vector<8x1x8xf32> to vector<8x16x8xf32>
    %17 = arith.divf %13, %16 : vector<8x16x8xf32>
    %cst_10 = arith.constant dense<0.000000e+00> : vector<8x16xf32>
    %18 = vector.multi_reduction <add>, %17, %cst_10 [2] : vector<8x16x8xf32> to vector<8x16xf32>
    %19 = vector.shape_cast %18 : vector<8x16xf32> to vector<8x16x1xf32>
    %cst_11 = arith.constant 8.000000e+00 : f32
    %20 = vector.broadcast %cst_11 : f32 to vector<8x16x1xf32>
    %21 = arith.divf %19, %20 : vector<8x16x1xf32>
    %22 = vector.shape_cast %7 : vector<128x32xf32> to vector<8x16x32xf32>
    %23 = vector.broadcast %21 : vector<8x16x1xf32> to vector<8x16x32xf32>
    %24 = arith.mulf %23, %22 : vector<8x16x32xf32>
    %cst_12 = arith.constant dense<0.000000e+00> : vector<8x32xf32>
    %25 = vector.multi_reduction <add>, %24, %cst_12 [1] : vector<8x16x32xf32> to vector<8x32xf32>
    %c0_13 = arith.constant 0 : index
    %c0_14 = arith.constant 0 : index
    %26 = vector.load %arg5[%c0_13, %c0_14] : memref<1x32xf32, #tpu.memory_space<vmem>>, vector<1x32xf32>
    %27 = vector.broadcast %26 : vector<1x32xf32> to vector<8x32xf32>
    %28 = arith.mulf %25, %27 : vector<8x32xf32>
    %cst_15 = arith.constant dense<0.000000e+00> : vector<8xf32>
    %29 = vector.multi_reduction <add>, %28, %cst_15 [1] : vector<8x32xf32> to vector<8xf32>
    %30 = vector.shape_cast %29 : vector<8xf32> to vector<8x1xf32>
    %c0_16 = arith.constant 0 : index
    %c0_17 = arith.constant 0 : index
    %31 = vector.load %arg7[%c0_16, %c0_17] : memref<8x1xf32, #tpu.memory_space<vmem>>, vector<8x1xf32>
    tpu.vector_store %arg7[%c0_16, %c0_17], %30 {strides = array<i32>} : memref<8x1xf32, #tpu.memory_space<vmem>>, vector<8x1xf32>,
    %c0_18 = arith.constant 0 : index
    %c0_19 = arith.constant 0 : index
    %32 = vector.load %arg6[%c0_18, %c0_19] : memref<8x32xf32, #tpu.memory_space<vmem>>, vector<8x32xf32>
    tpu.vector_store %arg6[%c0_18, %c0_19], %25 {strides = array<i32>} : memref<8x32xf32, #tpu.memory_space<vmem>>, vector<8x32xf32>,
    return
  }
  func.func @transform_0(%arg0: i32) -> (i32, i32) {
    %c0_i32 = arith.constant 0 : i32
    %c0_i32_0 = arith.constant 0 : i32
    %c0_i32_1 = arith.constant 0 : i32
    return %c0_i32, %c0_i32_0 : i32, i32
  }
  func.func @transform_1(%arg0: i32) -> (i32, i32) {
    %c0_i32 = arith.constant 0 : i32
    %c0_i32_0 = arith.constant 0 : i32
    %c0_i32_1 = arith.constant 0 : i32
    return %c0_i32, %c0_i32_0 : i32, i32
  }
  func.func @transform_2(%arg0: i32) -> (i32, i32) {
    %c0_i32 = arith.constant 0 : i32
    %c0_i32_0 = arith.constant 0 : i32
    %c0_i32_1 = arith.constant 0 : i32
    return %c0_i32, %c0_i32_0 : i32, i32
  }
  func.func @transform_3(%arg0: i32) -> (i32, i32) {
    %c0_i32 = arith.constant 0 : i32
    %c0_i32_0 = arith.constant 0 : i32
    %c0_i32_1 = arith.constant 0 : i32
    return %c0_i32, %c0_i32_0 : i32, i32
  }
  func.func @transform_4(%arg0: i32) -> (i32, i32) {
    %c0_i32 = arith.constant 0 : i32
    %c0_i32_0 = arith.constant 0 : i32
    %c0_i32_1 = arith.constant 0 : i32
    return %c0_i32, %c0_i32_0 : i32, i32
  }
  func.func @transform_5(%arg0: i32) -> (i32, i32) {
    %c0_i32 = arith.constant 0 : i32
    %c0_i32_0 = arith.constant 0 : i32
    %c0_i32_1 = arith.constant 0 : i32
    return %c0_i32, %c0_i32_0 : i32, i32
  }
  func.func @transform_6(%arg0: i32) -> (i32, i32) {
    %c0_i32 = arith.constant 0 : i32
    %c0_i32_0 = arith.constant 0 : i32
    %c0_i32_1 = arith.constant 0 : i32
    return %c0_i32, %c0_i32_0 : i32, i32
  }
}

</mosaic_0001>

<bundles_post_ra>
// kernel: forward.1
= control target key start
LH: loop header
LB: loop body
LE: loop exit
PB: predicated region body
PF: predicated region fallthrough
CT: control target
= control target key end

     0   :  { %vm47_vm0 = vcmask 523264   ;;  %s1537_s0 = inlined_call_operand.vmem [shape: f32[128,64], index: 0, kind: input, shape index: {}]   ;;  %s1538_s1 = inlined_call_operand.vmem [shape: f32[64,8], index: 1, kind: input, shape index: {}]   ;;  %s1539_s2 = inlined_call_operand.vmem [shape: f32[64,32], index: 2, kind: input, shape index: {}]   ;;  %s1540_s3 = inlined_call_operand.vmem [shape: f32[1,32], index: 3, kind: input, shape index: {}]   ;;  %s1541_s4 = inlined_call_operand.vmem [shape: f32[1,32], index: 4, kind: input, shape index: {}]   ;;  %s1542_s5 = inlined_call_operand.hbm [shape: f32[8,32], index: 5, kind: output, shape index: {0}]   ;;  %s1543_s6 = inlined_call_operand.vmem [shape: f32[8,1], index: 6, kind: output, shape index: {1}]  }
   0x1   :  { %v39_v0 = vld [vmem:[%s1538_s1] sm:$0xff]  ;;  %v40_v1 = vld [vmem:[%s1538_s1 + $0x8] sm:$0xff]  ;;  %v41_v2 = vld [vmem:[%s1538_s1 + $0x10] sm:$0xff] }
   0x2   :  { %v1019_v3 = vpack.c.bf16 %v40_v1, %v39_v0  ;;  %v42_v4 = vld [vmem:[%s1538_s1 + $0x18] sm:$0xff]  ;;  %v43_v6 = vld [vmem:[%s1538_s1 + $0x20] sm:$0xff]  ;;  %v44_v7 = vld [vmem:[%s1538_s1 + $0x28] sm:$0xff] }
   0x3   :  { %v1023_v5 = vpack.c.bf16 %v42_v4, %v41_v2  ;;  %v23_v8 = vld [vmem:[%s1537_s0] sm:$0xff]  ;;  %v1027_v9 = vpack.c.bf16 %v44_v7, %v43_v6  ;;  %v45_v10 = vld [vmem:[%s1538_s1 + $0x30] sm:$0xff]  ;;  %v46_v11 = vld [vmem:[%s1538_s1 + $0x38] sm:$0xff] }
   0x4   :  { %1020 = vmatprep.subr.bf16.mxu0 %v1019_v3  ;;  %955 = vmatprep.mubr.msk.f32.mxu0 %vm47_vm0, %v23_v8  ;;  %v241_v12 = vld [vmem:[%s1539_s2] sm:$0xff]  ;;  %v242_v13 = vld [vmem:[%s1539_s2 + $0x8] sm:$0xff]  ;;  %v243_v14 = vld [vmem:[%s1539_s2 + $0x10] sm:$0xff]  ;;  %v1031_v15 = vpack.c.bf16 %v46_v11, %v45_v10 }
   0x5   :  { %1022 = vmatpush3.bf16.msra.mxu0 %v1019_v3  ;;  %995 = vmatprep.mubr.msk.f32.mxu1 %vm47_vm0, %v23_v8  ;;  %v1035_v16 = vpack.c.bf16 %v242_v13, %v241_v12  ;;  %v244_v17 = vld [vmem:[%s1539_s2 + $0x18] sm:$0xff]  ;;  %v245_v19 = vld [vmem:[%s1539_s2 + $0x20] sm:$0xff]  ;;  %v246_v20 = vld [vmem:[%s1539_s2 + $0x28] sm:$0xff] }
   0x6   :  { %1024 = vmatprep.subr.bf16.mxu0 %v1023_v5  ;;  %v1039_v18 = vpack.c.bf16 %v244_v17, %v243_v14 }
   0x9   :  { %1026 = vmatpush3.bf16.msra.mxu0 %v1023_v5 }
   0xa   :  { %1028 = vmatprep.subr.bf16.mxu0 %v1027_v9 }
   0xb   :  { %12 = vsyncpa [#allocation3], 0  ;;  %1036 = vmatprep.subr.bf16.mxu1 %v1035_v16  ;;  %v1043_v21 = vpack.c.bf16 %v246_v20, %v245_v19  ;;  %v247_v22 = vld [vmem:[%s1539_s2 + $0x30] sm:$0xff]  ;;  %v248_v23 = vld [vmem:[%s1539_s2 + $0x38] sm:$0xff]  ;;  %vm401_vm1 = vcmask 64512   ;;  %vm699_vm2 = vcmask 261120  }
   0xc   :  { %1038 = vmatpush3.bf16.msra.mxu1 %v1035_v16  ;;  %v24_v24 = vld [vmem:[%s1537_s0 + $0x8] sm:$0xff]  ;;  %v25_v25 = vld [vmem:[%s1537_s0 + $0x10] sm:$0xff]  ;;  %v1047_v26 = vpack.c.bf16 %v248_v23, %v247_v22  ;;  %v26_v27 = vld [vmem:[%s1537_s0 + $0x18] sm:$0xff]  ;;  %vm796_vm3 = vcmask 1041409   ;;  %vm799_vm4 = vcmask 1042434   ;;  %vm802_vm5 = vcmask 1043459  }
   0xd   :  { %1030 = vmatpush3.bf16.msra.mxu0 %v1027_v9  ;;  %1040 = vmatprep.subr.bf16.mxu1 %v1039_v18  ;;  %v27_v28 = vld [vmem:[%s1537_s0 + $0x20] sm:$0xff]  ;;  %v28_v29 = vld [vmem:[%s1537_s0 + $0x28] sm:$0xff]  ;;  %v29_v30 = vld [vmem:[%s1537_s0 + $0x30] sm:$0xff]  ;;  %vm805_vm6 = vcmask 1044484   ;;  %vm808_vm7 = vcmask 1045509   ;;  %vm811_vm8 = vcmask 1046534  }
   0xe   :  { %1032 = vmatprep.subr.bf16.mxu0 %v1031_v15  ;;  %v30_v31 = vld [vmem:[%s1537_s0 + $0x38] sm:$0xff]  ;;  %v31_v32 = vld [vmem:[%s1537_s0 + $0x40] sm:$0xff]  ;;  %v32_v33 = vld [vmem:[%s1537_s0 + $0x48] sm:$0xff]  ;;  %vm814_vm9 = vcmask 1047559  }
   0xf   :  { %v33_v34 = vld [vmem:[%s1537_s0 + $0x50] sm:$0xff]  ;;  %v34_v35 = vld [vmem:[%s1537_s0 + $0x58] sm:$0xff]  ;;  %v35_v36 = vld [vmem:[%s1537_s0 + $0x60] sm:$0xff] }
  0x10   :  { %1042 = vmatpush3.bf16.msra.mxu1 %v1039_v18  ;;  %v36_v37 = vld [vmem:[%s1537_s0 + $0x68] sm:$0xff]  ;;  %v37_v38 = vld [vmem:[%s1537_s0 + $0x70] sm:$0xff]  ;;  %v38_v39 = vld [vmem:[%s1537_s0 + $0x78] sm:$0xff] }
  0x11   :  { %1034 = vmatpush3.bf16.msra.mxu0 %v1031_v15  ;;  %1044 = vmatprep.subr.bf16.mxu1 %v1043_v21 }
  0x14   :  { %956 = vmatmul.mubr.msk.f32.vlgmr.msra.gmra.mrb[0].mxu0 %vm47_vm0, %v24_v24  ;;  %1046 = vmatpush3.bf16.msra.mxu1 %v1043_v21 }
  0x15   :  { %958 = vmatprep.mubr.msk.f32.mxu0 %vm47_vm0, %v25_v25  ;;  %1048 = vmatprep.subr.bf16.mxu1 %v1047_v26 }
  0x18   :  { %959 = vmatmul.mubr.msk.f32.gmra.mrb[2].mxu0 %vm47_vm0, %v26_v27  ;;  %1050 = vmatpush3.bf16.msra.mxu1 %v1047_v26 }
  0x19   :  { %961 = vmatprep.mubr.msk.f32.mxu0 %vm47_vm0, %v27_v28 }
  0x1b   :  { %996 = vmatmul.mubr.msk.f32.vlgmr.msra.gmra.mrb[0].mxu1 %vm47_vm0, %v24_v24 }
  0x1c   :  { %962 = vmatmul.mubr.msk.f32.gmra.mrb[4].mxu0 %vm47_vm0, %v28_v29  ;;  %998 = vmatprep.mubr.msk.f32.mxu1 %vm47_vm0, %v25_v25 }
  0x1d   :  { %964 = vmatprep.mubr.msk.f32.mxu0 %vm47_vm0, %v29_v30 }
  0x1f   :  { %999 = vmatmul.mubr.msk.f32.gmra.mrb[2].mxu1 %vm47_vm0, %v26_v27 }
  0x20   :  { %965 = vmatmul.mubr.msk.f32.gmra.mrb[6].mxu0 %vm47_vm0, %v30_v31  ;;  %1001 = vmatprep.mubr.msk.f32.mxu1 %vm47_vm0, %v27_v28 }
  0x21   :  { %967 = vmatprep.mubr.msk.f32.mxu0 %vm47_vm0, %v31_v32 }
  0x23   :  { %1002 = vmatmul.mubr.msk.f32.gmra.mrb[4].mxu1 %vm47_vm0, %v28_v29 }
  0x24   :  { %968 = vmatmul.mubr.msk.f32.gmra.mrb[8].mxu0 %vm47_vm0, %v32_v33  ;;  %1004 = vmatprep.mubr.msk.f32.mxu1 %vm47_vm0, %v29_v30 }
  0x25   :  { %970 = vmatprep.mubr.msk.f32.mxu0 %vm47_vm0, %v33_v34 }
  0x27   :  { %1005 = vmatmul.mubr.msk.f32.gmra.mrb[6].mxu1 %vm47_vm0, %v30_v31 }
  0x28   :  { %971 = vmatmul.mubr.msk.f32.gmra.mrb[10].mxu0 %vm47_vm0, %v34_v35  ;;  %1007 = vmatprep.mubr.msk.f32.mxu1 %vm47_vm0, %v31_v32 }
  0x29   :  { %973 = vmatprep.mubr.msk.f32.mxu0 %vm47_vm0, %v35_v36 }
  0x2b   :  { %1008 = vmatmul.mubr.msk.f32.gmra.mrb[8].mxu1 %vm47_vm0, %v32_v33 }
  0x2c   :  { %974 = vmatmul.mubr.msk.f32.gmra.mrb[12].mxu0 %vm47_vm0, %v36_v37  ;;  %1010 = vmatprep.mubr.msk.f32.mxu1 %vm47_vm0, %v33_v34 }
  0x2d   :  { %976 = vmatprep.mubr.msk.f32.mxu0 %vm47_vm0, %v37_v38 }
  0x2f   :  { %1011 = vmatmul.mubr.msk.f32.gmra.mrb[10].mxu1 %vm47_vm0, %v34_v35 }
  0x30   :  { %977 = vmatmul.mubr.msk.f32.gmra.mrb[14].mxu0 %vm47_vm0, %v38_v39  ;;  %1013 = vmatprep.mubr.msk.f32.mxu1 %vm47_vm0, %v35_v36 }
  0x33   :  { %1014 = vmatmul.mubr.msk.f32.gmra.mrb[12].mxu1 %vm47_vm0, %v36_v37 }
  0x34   :  { %1016 = vmatprep.mubr.msk.f32.mxu1 %vm47_vm0, %v37_v38 }
  0x37   :  { %1017 = vmatmul.mubr.msk.f32.gmra.mrb[14].mxu1 %vm47_vm0, %v38_v39 }
  0xe7   :  { %v957_v40 = vpop.f32.mrb[0].mxu0 }
  0xe8   :  { %v403_v41 = vsel %vm401_vm1, %v957_v40, -inf  ;;  %v162_v42 = vpop.f32.mrb[1].mxu0 }
  0xe9   :  { %v402_v43 = vsel %vm401_vm1, %v162_v42, -inf }
  0xea   :  { %v404_v44 = vmax.f32 %v402_v43, %v403_v41 }
  0xeb   :  { %v960_v45 = vpop.f32.mrb[2].mxu0 }
  0xec   :  { %v405_v46 = vrot.slane %v404_v44, 4  ;;  %v412_v47 = vsel %vm401_vm1, %v960_v45, -inf  ;;  %v172_v48 = vpop.f32.mrb[3].mxu0 }
  0xed   :  { %v411_v49 = vsel %vm401_vm1, %v172_v48, -inf }
  0xee   :  { %v406_v50 = vmax.f32 %v404_v44, %v405_v46  ;;  %v413_v51 = vmax.f32 %v411_v49, %v412_v47  ;;  %v1294_v53 = vpop.f32.mrb[0].mxu1 }
  0xef   :  { %v1292_v52 = vpop.f32.mrb[4].mxu0  ;;  %v1298_v58 = vpop.f32.mrb[1].mxu1 }
  0xf0   :  { %v407_v54 = vrot.slane %v406_v50, 2  ;;  %v414_v55 = vrot.slane %v413_v51, 4  ;;  %v421_v56 = vsel %vm401_vm1, %v1292_v52, -inf  ;;  %v182_v57 = vpop.f32.mrb[5].mxu0 }
  0xf1   :  { %v420_v59 = vsel %vm401_vm1, %v182_v57, -inf }
  0xf2   :  { %v408_v60 = vmax.f32 %v406_v50, %v407_v54  ;;  %v415_v61 = vmax.f32 %v413_v51, %v414_v55  ;;  %v422_v62 = vmax.f32 %v420_v59, %v421_v56 }
  0xf3   :  { %v1301_v63 = vpop.f32.mrb[6].mxu0 }
  0xf4   :  { %v409_v0 = vrot.slane %v408_v60, 1  ;;  %v416_v1 = vrot.slane %v415_v61, 2  ;;  %v423_v2 = vrot.slane %v422_v62, 4  ;;  %v430_v3 = vsel %vm401_vm1, %v1301_v63, -inf  ;;  %v1305_v4 = vpop.f32.mrb[7].mxu0 }
  0xf5   :  { %v429_v5 = vsel %vm401_vm1, %v1305_v4, -inf }
  0xf6   :  { %v410_v6 = vmax.f32 %v408_v60, %v409_v0  ;;  %v417_v7 = vmax.f32 %v415_v61, %v416_v1  ;;  %v424_v8 = vmax.f32 %v422_v62, %v423_v2  ;;  %v431_v9 = vmax.f32 %v429_v5, %v430_v3 }
  0xf7   :  { %v1309_v10 = vpop.f32.mrb[8].mxu0 }
  0xf8   :  { %v474_v11 = vsub.f32 %v162_v42, %v410_v6  ;;  %v475_v12 = vsub.f32 %v957_v40, %v410_v6  ;;  %v418_v13 = vrot.slane %v417_v7, 1  ;;  %v425_v14 = vrot.slane %v424_v8, 2  ;;  %v1311_v15 = vpop.f32.mrb[9].mxu0 }
  0xf9   :  { %v432_v16 = vrot.slane %v431_v9, 4  ;;  %v439_v17 = vsel %vm401_vm1, %v1309_v10, -inf  ;;  %v438_v18 = vsel %vm401_vm1, %v1311_v15, -inf }
  0xfa   :  { %v490_v19 = vmul.f32 1.442695, %v474_v11  ;;  %v492_v20 = vmul.f32 1.442695, %v475_v12  ;;  %v419_v21 = vmax.f32 %v417_v7, %v418_v13  ;;  %v426_v22 = vmax.f32 %v424_v8, %v425_v14 }
  0xfb   :  { %v433_v23 = vmax.f32 %v431_v9, %v432_v16  ;;  %v440_v24 = vmax.f32 %v438_v18, %v439_v17  ;;  %v1317_v25 = vpop.f32.mrb[10].mxu0 }
  0xfc   :  { %1052 = vpow2.f32 %v490_v19  ;;  %v476_v26 = vsub.f32 %v172_v48, %v419_v21  ;;  %v477_v27 = vsub.f32 %v960_v45, %v419_v21  ;;  %v427_v28 = vrot.slane %v426_v22, 1  ;;  %v1319_v29 = vpop.f32.mrb[11].mxu0 }
  0xfd   :  { %1054 = vpow2.f32 %v492_v20  ;;  %v434_v30 = vrot.slane %v433_v23, 2  ;;  %v441_v31 = vrot.slane %v440_v24, 4  ;;  %v448_v32 = vsel %vm401_vm1, %v1317_v25, -inf }
  0xfe   :  { %v494_v33 = vmul.f32 1.442695, %v476_v26  ;;  %v496_v34 = vmul.f32 1.442695, %v477_v27  ;;  %v428_v35 = vmax.f32 %v426_v22, %v427_v28  ;;  %v447_v36 = vsel %vm401_vm1, %v1319_v29, -inf }
  0xff   :  { %v435_v37 = vmax.f32 %v433_v23, %v434_v30  ;;  %v442_v38 = vmax.f32 %v440_v24, %v441_v31  ;;  %v449_v39 = vmax.f32 %v447_v36, %v448_v32  ;;  %v1325_v40 = vpop.f32.mrb[12].mxu0 }
 0x100   :  { %1056 = vpow2.f32 %v494_v33  ;;  %v478_v41 = vsub.f32 %v182_v57, %v428_v35  ;;  %v479_v42 = vsub.f32 %v1292_v52, %v428_v35  ;;  %v457_v43 = vsel %vm401_vm1, %v1325_v40, -inf  ;;  %v1330_v44 = vpop.f32.mrb[13].mxu0 }
 0x101   :  { %1058 = vpow2.f32 %v496_v34  ;;  %v436_v45 = vrot.slane %v435_v37, 1  ;;  %v443_v46 = vrot.slane %v442_v38, 2  ;;  %v450_v47 = vrot.slane %v449_v39, 4 }
 0x102   :  { %v498_v48 = vmul.f32 1.442695, %v478_v41  ;;  %v500_v49 = vmul.f32 1.442695, %v479_v42  ;;  %v456_v50 = vsel %vm401_vm1, %v1330_v44, -inf }
 0x103   :  { %v437_v51 = vmax.f32 %v435_v37, %v436_v45  ;;  %v444_v54 = vmax.f32 %v442_v38, %v443_v46  ;;  %v451_v55 = vmax.f32 %v449_v39, %v450_v47  ;;  %v458_v56 = vmax.f32 %v456_v50, %v457_v43  ;;  %v1334_v57 = vpop.f32.mrb[14].mxu0 }
 0x104   :  { %1060 = vpow2.f32 %v498_v48  ;;  %v466_v52 = vsel %vm401_vm1, %v1334_v57, -inf  ;;  %v1338_v59 = vpop.f32.mrb[15].mxu0 }
 0x105   :  { %1062 = vpow2.f32 %v500_v49  ;;  %v480_v60 = vsub.f32 %v1305_v4, %v437_v51  ;;  %v481_v61 = vsub.f32 %v1301_v63, %v437_v51  ;;  %v445_v62 = vrot.slane %v444_v54, 1 }
 0x106   :  { %v1342_v0 = vpop.eup %1052  ;;  %v452_v1 = vrot.slane %v451_v55, 2  ;;  %v459_v2 = vrot.slane %v458_v56, 4  ;;  %v465_v3 = vsel %vm401_vm1, %v1338_v59, -inf }
 0x107   :  { %v1346_v5 = vpop.eup %1054  ;;  %v522_v6 = vsel %vm401_vm1, %v1342_v0, 0.0  ;;  %v502_v7 = vmul.f32 1.442695, %v480_v60  ;;  %v504_v8 = vmul.f32 1.442695, %v481_v61  ;;  %v446_v9 = vmax.f32 %v444_v54, %v445_v62 }
 0x108   :  { %v523_v4 = vsel %vm401_vm1, %v1346_v5, 0.0  ;;  %v453_v63 = vmax.f32 %v451_v55, %v452_v1  ;;  %v460_v11 = vmax.f32 %v458_v56, %v459_v2  ;;  %v467_v12 = vmax.f32 %v465_v3, %v466_v52 }
 0x109   :  { %v524_v13 = vadd.f32 %v523_v4, %v522_v6  ;;  %1064 = vpow2.f32 %v502_v7  ;;  %v482_v14 = vsub.f32 %v1311_v15, %v446_v9  ;;  %v483_v16 = vsub.f32 %v1309_v10, %v446_v9 }
 0x10a   :  { %v1354_v17 = vpop.eup %1056  ;;  %1066 = vpow2.f32 %v504_v8  ;;  %v454_v18 = vrot.slane %v453_v63, 1  ;;  %v461_v19 = vrot.slane %v460_v11, 2  ;;  %v468_v20 = vrot.slane %v467_v12, 4 }
 0x10b   :  { %v1356_v21 = vpop.eup %1058  ;;  %v525_v22 = vrot.slane %v524_v13, 4  ;;  %v531_v23 = vsel %vm401_vm1, %v1354_v17, 0.0  ;;  %v506_v24 = vmul.f32 1.442695, %v482_v14  ;;  %v508_v26 = vmul.f32 1.442695, %v483_v16 }
 0x10c   :  { %v532_v27 = vsel %vm401_vm1, %v1356_v21, 0.0  ;;  %v455_v15 = vmax.f32 %v453_v63, %v454_v18  ;;  %v462_v28 = vmax.f32 %v460_v11, %v461_v19  ;;  %v469_v10 = vmax.f32 %v467_v12, %v468_v20 }
 0x10d   :  { %v526_v30 = vadd.f32 %v525_v22, %v524_v13  ;;  %v533_v31 = vadd.f32 %v532_v27, %v531_v23  ;;  %1068 = vpow2.f32 %v506_v24 }
 0x10e   :  { %v1362_v32 = vpop.eup %1060  ;;  %1070 = vpow2.f32 %v508_v26  ;;  %v484_v33 = vsub.f32 %v1319_v29, %v455_v15  ;;  %v485_v34 = vsub.f32 %v1317_v25, %v455_v15  ;;  %v463_v35 = vrot.slane %v462_v28, 1 }
 0x10f   :  { %v1366_v36 = vpop.eup %1062  ;;  %v534_v37 = vrot.slane %v533_v31, 4  ;;  %v540_v38 = vsel %vm401_vm1, %v1362_v32, 0.0  ;;  %v470_v39 = vrot.slane %v469_v10, 2  ;;  %v527_v41 = vrot.slane %v526_v30, 2 }
 0x110   :  { %v541_v42 = vsel %vm401_vm1, %v1366_v36, 0.0  ;;  %v510_v43 = vmul.f32 1.442695, %v484_v33  ;;  %v512_v45 = vmul.f32 1.442695, %v485_v34  ;;  %v464_v46 = vmax.f32 %v462_v28, %v463_v35 }
 0x111   :  { %v535_v47 = vadd.f32 %v534_v37, %v533_v31  ;;  %v542_v48 = vadd.f32 %v541_v42, %v540_v38  ;;  %v471_v29 = vmax.f32 %v469_v10, %v470_v39  ;;  %v528_v49 = vadd.f32 %v527_v41, %v526_v30 }
 0x112   :  { %1072 = vpow2.f32 %v510_v43  ;;  %v486_v25 = vsub.f32 %v1330_v44, %v464_v46  ;;  %v487_v50 = vsub.f32 %v1325_v40, %v464_v46 }
 0x113   :  { %v1374_v51 = vpop.eup %1064  ;;  %v543_v54 = vrot.slane %v542_v48, 4  ;;  %1074 = vpow2.f32 %v512_v45  ;;  %v472_v55 = vrot.slane %v471_v29, 1  ;;  %v529_v56 = vrot.slane %v528_v49, 1 }
 0x114   :  { %v1376_v52 = vpop.eup %1066  ;;  %v549_v60 = vsel %vm401_vm1, %v1374_v51, 0.0  ;;  %v514_v61 = vmul.f32 1.442695, %v486_v25  ;;  %v516_v62 = vmul.f32 1.442695, %v487_v50  ;;  %v536_v1 = vrot.slane %v535_v47, 2 }
 0x115   :  { %v544_v2 = vadd.f32 %v543_v54, %v542_v48  ;;  %v550_v44 = vsel %vm401_vm1, %v1376_v52, 0.0  ;;  %v473_v3 = vmax.f32 %v471_v29, %v472_v55  ;;  %v530_v40 = vadd.f32 %v529_v56, %v528_v49 }
 0x116   :  { %v551_v6 = vadd.f32 %v550_v44, %v549_v60  ;;  %1076 = vpow2.f32 %v514_v61  ;;  %v537_v7 = vadd.f32 %v536_v1, %v535_v47 }
 0x117   :  { %v1382_v8 = vpop.eup %1068  ;;  %1078 = vpow2.f32 %v516_v62  ;;  %v488_v9 = vsub.f32 %v1338_v59, %v473_v3  ;;  %v489_v4 = vsub.f32 %v1334_v57, %v473_v3  ;;  %v545_v63 = vrot.slane %v544_v2, 2 }
 0x118   :  { %v1386_v11 = vpop.eup %1070  ;;  %v552_v12 = vrot.slane %v551_v6, 4  ;;  %v558_v13 = vsel %vm401_vm1, %v1382_v8, 0.0  ;;  %1080 = vrcp.f32 %v530_v40  ;;  %v538_v14 = vrot.slane %v537_v7, 1 }
 0x119   :  { %v559_v16 = vsel %vm401_vm1, %v1386_v11, 0.0  ;;  %v518_v18 = vmul.f32 1.442695, %v488_v9  ;;  %v520_v19 = vmul.f32 1.442695, %v489_v4  ;;  %v546_v20 = vadd.f32 %v545_v63, %v544_v2 }
 0x11a   :  { %v553_v22 = vadd.f32 %v552_v12, %v551_v6  ;;  %v560_v23 = vadd.f32 %v559_v16, %v558_v13  ;;  %v539_v59 = vadd.f32 %v538_v14, %v537_v7 }
 0x11b   :  { %1082 = vpow2.f32 %v518_v18  ;;  %v547_v57 = vrot.slane %v546_v20, 1 }
 0x11c   :  { %v1392_v24 = vpop.eup %1072  ;;  %v561_v26 = vrot.slane %v560_v23, 4  ;;  %1084 = vpow2.f32 %v520_v19  ;;  %v554_v27 = vrot.slane %v553_v22, 2 }
 0x11d   :  { %v1394_v15 = vpop.eup %1074  ;;  %v567_v28 = vsel %vm401_vm1, %v1392_v24, 0.0  ;;  %1086 = vrcp.f32 %v539_v59  ;;  %v548_v10 = vadd.f32 %v547_v57, %v546_v20 }
 0x11e   :  { %v562_v30 = vadd.f32 %v561_v26, %v560_v23  ;;  %v568_v31 = vsel %vm401_vm1, %v1394_v15, 0.0  ;;  %v555_v33 = vadd.f32 %v554_v27, %v553_v22 }
 0x11f   :  { %v569_v34 = vadd.f32 %v568_v31, %v567_v28  ;;  %1088 = vrcp.f32 %v548_v10 }
 0x120   :  { %v1400_v35 = vpop.eup %1076  ;;  %v556_v37 = vrot.slane %v555_v33, 1  ;;  %v563_v38 = vrot.slane %v562_v30, 2 }
 0x121   :  { %v1402_v39 = vpop.eup %1078  ;;  %v570_v41 = vrot.slane %v569_v34, 4  ;;  %v576_v42 = vsel %vm401_vm1, %v1400_v35, 0.0 }
 0x122   :  { %v1081_v43 = vpop.eup %1080  ;;  %v577_v45 = vsel %vm401_vm1, %v1402_v39, 0.0  ;;  %v557_v46 = vadd.f32 %v556_v37, %v555_v33  ;;  %v564_v47 = vadd.f32 %v563_v38, %v562_v30 }
 0x123   :  { %v571_v48 = vadd.f32 %v570_v41, %v569_v34  ;;  %v578_v29 = vadd.f32 %v577_v45, %v576_v42  ;;  %v596_v49 = vmul.f32 %v1081_v43, %v1346_v5  ;;  %v595_v25 = vmul.f32 %v1081_v43, %v1342_v0  ;;  %v1000_v43 = vpop.f32.mrb[2].mxu1 }
 0x124   :  { %1090 = vrcp.f32 %v557_v46  ;;  %v565_v50 = vrot.slane %v564_v47, 1 }
 0x125   :  { %v1410_v54 = vpop.eup %1082  ;;  %v579_v55 = vrot.slane %v578_v29, 4  ;;  %v621_v56 = vsel %vm401_vm1, %v596_v49, 0.0  ;;  %v618_v60 = vsel %vm401_vm1, %v595_v25, 0.0  ;;  %v572_v61 = vrot.slane %v571_v48, 2 }
 0x126   :  { %v1414_v62 = vpop.eup %1084  ;;  %v585_v1 = vsel %vm401_vm1, %v1410_v54, 0.0  ;;  %622 = vadd.xlane.f32.xlu1 %v621_v56  ;;  %619 = vadd.xlane.f32.xlu0 %v618_v60  ;;  %v566_v5 = vadd.f32 %v565_v50, %v564_v47 }
 0x127   :  { %v1087_v2 = vpop.eup %1086  ;;  %v580_v0 = vadd.f32 %v579_v55, %v578_v29  ;;  %v586_v44 = vsel %vm401_vm1, %v1414_v62, 0.0  ;;  %v573_v3 = vadd.f32 %v572_v61, %v571_v48 }
 0x128   :  { %v587_v40 = vadd.f32 %v586_v44, %v585_v1  ;;  %v598_v6 = vmul.f32 %v1087_v2, %v1354_v17  ;;  %v599_v7 = vmul.f32 %v1087_v2, %v1356_v21  ;;  %1092 = vrcp.f32 %v566_v5 }
 0x129   :  { %v1089_v9 = vpop.eup %1088  ;;  %v574_v4 = vrot.slane %v573_v3, 1  ;;  %v581_v63 = vrot.slane %v580_v0, 2 }
 0x12a   :  { %v588_v12 = vrot.slane %v587_v40, 4  ;;  %v624_v13 = vsel %vm401_vm1, %v598_v6, 0.0  ;;  %v601_v14 = vmul.f32 %v1089_v9, %v1362_v32  ;;  %v602_v16 = vmul.f32 %v1089_v9, %v1366_v36 }
 0x12b   :  { %625 = vadd.xlane.f32.xlu0 %v624_v13  ;;  %v575_v18 = vadd.f32 %v574_v4, %v573_v3  ;;  %v582_v19 = vadd.f32 %v581_v63, %v580_v0  ;;  %v627_v59 = vsel %vm401_vm1, %v599_v7, 0.0 }
 0x12c   :  { %v589_v20 = vadd.f32 %v588_v12, %v587_v40  ;;  %v630_v22 = vsel %vm401_vm1, %v601_v14, 0.0  ;;  %v633_v36 = vsel %vm401_vm1, %v602_v16, 0.0 }
 0x12d   :  { %631 = vadd.xlane.f32.xlu1 %v630_v22  ;;  %1094 = vrcp.f32 %v575_v18  ;;  %v583_v17 = vrot.slane %v582_v19, 1 }
 0x12e   :  { %v1091_v21 = vpop.eup %1090  ;;  %v590_v23 = vrot.slane %v589_v20, 2 }
 0x12f   :  { %628 = vadd.xlane.f32.xlu0 %v627_v59  ;;  %v604_v57 = vmul.f32 %v1091_v21, %v1374_v51  ;;  %v605_v32 = vmul.f32 %v1091_v21, %v1376_v52  ;;  %v584_v26 = vadd.f32 %v583_v17, %v582_v19 }
 0x130   :  { %v591_v27 = vadd.f32 %v590_v23, %v589_v20 }
 0x131   :  { %634 = vadd.xlane.f32.xlu1 %v633_v36  ;;  %v636_v28 = vsel %vm401_vm1, %v604_v57, 0.0  ;;  %1096 = vrcp.f32 %v584_v26  ;;  %v639_v34 = vsel %vm401_vm1, %v605_v32, 0.0 }
 0x132   :  { %v1093_v10 = vpop.eup %1092  ;;  %v592_v30 = vrot.slane %v591_v27, 1 }
 0x133   :  { %637 = vadd.xlane.f32.xlu0 %v636_v28  ;;  %v607_v31 = vmul.f32 %v1093_v10, %v1382_v8  ;;  %v608_v33 = vmul.f32 %v1093_v10, %v1386_v11  ;;  %v332_v8 = vpop.f32.mrb[3].mxu1 }
 0x134   :  { %v593_v51 = vadd.f32 %v592_v30, %v591_v27  ;;  %v1003_v29 = vpop.f32.mrb[4].mxu1 }
 0x135   :  { %640 = vadd.xlane.f32.xlu1 %v639_v34  ;;  %v642_v52 = vsel %vm401_vm1, %v607_v31, 0.0  ;;  %v645_v38 = vsel %vm401_vm1, %v608_v33, 0.0  ;;  %v342_v49 = vpop.f32.mrb[5].mxu1 }
 0x136   :  { %1098 = vrcp.f32 %v593_v51  ;;  %v1006_v50 = vpop.f32.mrb[6].mxu1 }
 0x137   :  { %v1095_v37 = vpop.eup %1094  ;;  %643 = vadd.xlane.f32.xlu0 %v642_v52  ;;  %v352_v60 = vpop.f32.mrb[7].mxu1 }
 0x138   :  { %v610_v41 = vmul.f32 %v1095_v37, %v1392_v24  ;;  %v611_v42 = vmul.f32 %v1095_v37, %v1394_v15  ;;  %v1009_v61 = vpop.f32.mrb[8].mxu1 }
 0x139   :  { %646 = vadd.xlane.f32.xlu1 %v645_v38  ;;  %v362_v1 = vpop.f32.mrb[9].mxu1 }
 0x13a   :  { %v648_v11 = vsel %vm401_vm1, %v610_v41, 0.0  ;;  %v651_v46 = vsel %vm401_vm1, %v611_v42, 0.0  ;;  %v1448_v5 = vpop.f32.mrb[10].mxu1 }
 0x13b   :  { %v1097_v45 = vpop.eup %1096  ;;  %649 = vadd.xlane.f32.xlu0 %v648_v11  ;;  %v372_v2 = vpop.f32.mrb[11].mxu1 }
 0x13c   :  { %v613_v47 = vmul.f32 %v1097_v45, %v1400_v35  ;;  %v614_v48 = vmul.f32 %v1097_v45, %v1402_v39  ;;  %v1450_v0 = vpop.f32.mrb[12].mxu1 }
 0x13d   :  { %652 = vadd.xlane.f32.xlu1 %v651_v46  ;;  %v382_v44 = vpop.f32.mrb[13].mxu1 }
 0x13e   :  { %v654_v24 = vsel %vm401_vm1, %v613_v47, 0.0  ;;  %v657_v25 = vsel %vm401_vm1, %v614_v48, 0.0  ;;  %v1452_v3 = vpop.f32.mrb[14].mxu1 }
 0x13f   :  { %655 = vadd.xlane.f32.xlu0 %v654_v24 }
 0x140   :  { %v1099_v15 = vpop.eup %1098 }
 0x141   :  { %658 = vadd.xlane.f32.xlu1 %v657_v25  ;;  %v616_v55 = vmul.f32 %v1099_v15, %v1410_v54  ;;  %v617_v56 = vmul.f32 %v1099_v15, %v1414_v62  ;;  %v1454_v54 = vpop.f32.mrb[15].mxu1  ;;  %v1459_v62 = vld [vmem:[%s1540_s3] ss:$0 sm:$0xff] }
 0x142   :  { %v328_v40 = vadd.f32 %v1294_v53, %v1459_v62  ;;  %v323_v6 = vadd.f32 %v1459_v62, %v1298_v58  ;;  %v333_v18 = vadd.f32 %v1459_v62, %v332_v8  ;;  %v338_v58 = vadd.f32 %v1000_v43, %v1459_v62 }
 0x143   :  { %v660_v35 = vsel %vm401_vm1, %v616_v55, 0.0  ;;  %v663_v39 = vsel %vm401_vm1, %v617_v56, 0.0  ;;  %v343_v21 = vadd.f32 %v1459_v62, %v342_v49  ;;  %v348_v26 = vadd.f32 %v1003_v29, %v1459_v62 }
 0x144   :  { %661 = vadd.xlane.f32.xlu0 %v660_v35  ;;  %v353_v27 = vadd.f32 %v1459_v62, %v352_v60  ;;  %v358_v51 = vadd.f32 %v1006_v50, %v1459_v62  ;;  %v363_v8 = vadd.f32 %v1459_v62, %v362_v1  ;;  %v368_v24 = vadd.f32 %v1009_v61, %v1459_v62 }
 0x145   :  { %664 = vadd.xlane.f32.xlu1 %v663_v39  ;;  %v373_v56 = vadd.f32 %v1459_v62, %v372_v2  ;;  %v378_v39 = vadd.f32 %v1448_v5, %v1459_v62  ;;  %v388_v2 = vadd.f32 %v1450_v0, %v1459_v62  ;;  %v393_v5 = vadd.f32 %v1459_v62, %v1454_v54 }
 0x1b3   :  { %v623_v7 = vpop.xlane.xlu1 %622  ;;  %v620_v9 = vpop.xlane.xlu0 %619 }
 0x1b4   :  { %v668_v4 = vmul.f32 0.125, %v623_v7  ;;  %v667_v63 = vmul.f32 0.125, %v620_v9 }
 0x1b6   :  { %v684_v12 = vmul.f32 %v668_v4, %v328_v40  ;;  %v683_v13 = vmul.f32 %v667_v63, %v323_v6  ;;  %v383_v40 = vadd.f32 %v1459_v62, %v382_v44  ;;  %v1492_v44 = vld [vmem:[%s1541_s4] ss:$0 sm:$0xff]  ;;  %s1124_s4 = smov [#allocation2]  }
 0x1b7   :  { %s845_s2 = sshll.u32 %s1124_s4, 4  ;;  %s846_s2 = int_to_ptr.vmem [resolvable:$true] %s845_s2 }
 0x1b8   :  { %v701_v14 = vsel %vm699_vm2, %v684_v12, 0.0  ;;  %v700_v16 = vsel %vm699_vm2, %v683_v13, 0.0  ;;  %v626_v19 = vpop.xlane.xlu0 %625  ;;  %s1100_s12 = scalar_lea.vmem %s846_s2, 128  ;;  %p1105_p1 = scmp.lt.s32.totalorder %s846_s2, %s846_s2 }
 0x1b9   :  { %v702_v20 = vadd.f32 %v701_v14, %v700_v16  ;;  %v669_v22 = vmul.f32 0.125, %v626_v19  ;;  %p1101_p0 = scmp.ne.s32.totalorder %s846_s2, %s1100_s12  ;;  %p1106_p2 = scmp.lt.s32.totalorder %s1100_s12, %s1100_s12 }
 0x1ba   :  { %v632_v53 = vpop.xlane.xlu1 %631 }
 0x1bb   :  { %v703_v17 = vrot.slane %v702_v20, 4  ;;  %v671_v23 = vmul.f32 0.125, %v632_v53  ;;  %v685_v59 = vmul.f32 %v669_v22, %v333_v18  ;;  %p1107_p3 = por %p1106_p2, %p1105_p1 }
 0x1bc   :  { %v629_v57 = vpop.xlane.xlu0 %628 }
 0x1bd   :  { %v704_v32 = vadd.f32 %v703_v17, %v702_v20  ;;  %v670_v36 = vmul.f32 0.125, %v629_v57  ;;  %v687_v31 = vmul.f32 %v671_v23, %v343_v21  ;;  %v709_v34 = vsel %vm699_vm2, %v685_v59, 0.0  ;;  %p1108_p4 = pnand %p1107_p3, %p1101_p0 }
 0x1be   :  { %v635_v28 = vpop.xlane.xlu1 %634  ;;  %v398_v17 = vadd.f32 %v1452_v3, %v1459_v62 }
 0x1bf   :  { %v705_v10 = vrot.slane %v704_v32, 2  ;;  %v686_v30 = vmul.f32 %v670_v36, %v338_v58  ;;  %v672_v33 = vmul.f32 0.125, %v635_v28  ;;  %v718_v45 = vsel %vm699_vm2, %v687_v31, 0.0 }
 0x1c0   :  { %v638_v52 = vpop.xlane.xlu0 %637 }
 0x1c1   :  { %v706_v37 = vadd.f32 %v705_v10, %v704_v32  ;;  %v710_v38 = vsel %vm699_vm2, %v686_v30, 0.0  ;;  %v688_v41 = vmul.f32 %v672_v33, %v348_v26  ;;  %v673_v42 = vmul.f32 0.125, %v638_v52 }
 0x1c2   :  { %v711_v43 = vadd.f32 %v710_v38, %v709_v34  ;;  %v641_v11 = vpop.xlane.xlu1 %640 }
 0x1c3   :  { %v719_v46 = vsel %vm699_vm2, %v688_v41, 0.0  ;;  %v689_v47 = vmul.f32 %v673_v42, %v353_v27  ;;  %v674_v48 = vmul.f32 0.125, %v641_v11  ;;  %v707_v25 = vrot.slane %v706_v37, 1 }
 0x1c4   :  { %v712_v29 = vrot.slane %v711_v43, 4  ;;  %v720_v49 = vadd.f32 %v719_v46, %v718_v45  ;;  %v644_v15 = vpop.xlane.xlu0 %643 }
 0x1c5   :  { %v690_v50 = vmul.f32 %v674_v48, %v358_v51  ;;  %v675_v55 = vmul.f32 0.125, %v644_v15  ;;  %v727_v6 = vsel %vm699_vm2, %v689_v47, 0.0  ;;  %v708_v14 = vadd.f32 %v707_v25, %v706_v37 }
 0x1c6   :  { %v713_v60 = vadd.f32 %v712_v29, %v711_v43  ;;  %v721_v35 = vrot.slane %v720_v49, 4  ;;  %v647_v1 = vpop.xlane.xlu1 %646 }
 0x1c7   :  { %v728_v7 = vsel %vm699_vm2, %v690_v50, 0.0  ;;  %v691_v61 = vmul.f32 %v675_v55, %v363_v8  ;;  %v676_v9 = vmul.f32 0.125, %v647_v1  ;;  %v779_v36 = vmul.f32 %v1492_v44, %v708_v14 }
 0x1c8   :  { %v714_v4 = vrot.slane %v713_v60, 2  ;;  %v722_v63 = vadd.f32 %v721_v35, %v720_v49  ;;  %v729_v12 = vadd.f32 %v728_v7, %v727_v6  ;;  %v650_v13 = vpop.xlane.xlu0 %649 }
 0x1c9   :  { %v692_v16 = vmul.f32 %v676_v9, %v368_v24  ;;  %v677_v18 = vmul.f32 0.125, %v650_v13  ;;  %v736_v0 = vsel %vm699_vm2, %v691_v61, 0.0 }
 0x1ca   :  { %v715_v19 = vadd.f32 %v714_v4, %v713_v60  ;;  %v723_v20 = vrot.slane %v722_v63, 2  ;;  %v730_v22 = vrot.slane %v729_v12, 4  ;;  %v653_v53 = vpop.xlane.xlu1 %652 }
 0x1cb   :  { %v737_v58 = vsel %vm699_vm2, %v692_v16, 0.0  ;;  %v693_v21 = vmul.f32 %v677_v18, %v373_v56  ;;  %v678_v23 = vmul.f32 0.125, %v653_v53 }
 0x1cc   :  { %v716_v59 = vrot.slane %v715_v19, 1  ;;  %v724_v54 = vadd.f32 %v723_v20, %v722_v63  ;;  %v731_v57 = vadd.f32 %v730_v22, %v729_v12  ;;  %v738_v32 = vadd.f32 %v737_v58, %v736_v0  ;;  %v656_v26 = vpop.xlane.xlu0 %655 }
 0x1cd   :  { %v694_v27 = vmul.f32 %v678_v23, %v378_v39  ;;  %v679_v28 = vmul.f32 0.125, %v656_v26  ;;  %v745_v33 = vsel %vm699_vm2, %v693_v21, 0.0 }
 0x1ce   :  { %v717_v10 = vadd.f32 %v716_v59, %v715_v19  ;;  %v725_v30 = vrot.slane %v724_v54, 1  ;;  %v732_v3 = vrot.slane %v731_v57, 2  ;;  %v739_v62 = vrot.slane %v738_v32, 4  ;;  %v659_v31 = vpop.xlane.xlu1 %658 }
 0x1cf   :  { %v746_v34 = vsel %vm699_vm2, %v694_v27, 0.0  ;;  %v695_v51 = vmul.f32 %v679_v28, %v383_v40  ;;  %v680_v52 = vmul.f32 0.125, %v659_v31 }
 0x1d0   :  { %v780_v37 = vmul.f32 %v1492_v44, %v717_v10  ;;  %v830_v38 = vsel %vm796_vm3, %v717_v10, %v708_v14  ;;  %v726_v41 = vadd.f32 %v725_v30, %v724_v54  ;;  %v733_v42 = vadd.f32 %v732_v3, %v731_v57 }
 0x1d1   :  { %v740_v43 = vadd.f32 %v739_v62, %v738_v32  ;;  %v747_v8 = vadd.f32 %v746_v34, %v745_v33  ;;  %v754_v11 = vsel %vm699_vm2, %v695_v51, 0.0  ;;  %v696_v45 = vmul.f32 %v680_v52, %v388_v2  ;;  %v662_v46 = vpop.xlane.xlu0 %661 }
 0x1d2   :  { %v795_v47 = vrot.slane %v780_v37, 7  ;;  %v781_v48 = vmul.f32 %v1492_v44, %v726_v41  ;;  %v734_v29 = vrot.slane %v733_v42, 1  ;;  %v681_v49 = vmul.f32 0.125, %v662_v46  ;;  %v665_v24 = vpop.xlane.xlu1 %664 }
 0x1d3   :  { %v741_v15 = vrot.slane %v740_v43, 2  ;;  %v748_v25 = vrot.slane %v747_v8, 4  ;;  %v755_v50 = vsel %vm699_vm2, %v696_v45, 0.0  ;;  %v682_v55 = vmul.f32 0.125, %v665_v24 }
 0x1d4   :  { %v798_v56 = vrot.slane %v781_v48, 6  ;;  %v735_v60 = vadd.f32 %v734_v29, %v733_v42  ;;  %v756_v35 = vadd.f32 %v755_v50, %v754_v11  ;;  %v697_v39 = vmul.f32 %v681_v49, %v393_v5 }
 0x1d5   :  { %v742_v1 = vadd.f32 %v741_v15, %v740_v43  ;;  %v749_v40 = vadd.f32 %v748_v25, %v747_v8  ;;  %v698_v6 = vmul.f32 %v682_v55, %v398_v17  ;;  %v797_v7 = vsel %vm796_vm3, %v795_v47, %v779_v36 }
 0x1d6   :  { %v782_v61 = vmul.f32 %v1492_v44, %v735_v60  ;;  %v757_v9 = vrot.slane %v756_v35, 4  ;;  %v763_v4 = vsel %vm699_vm2, %v697_v39, 0.0  ;;  %v800_v63 = vsel %vm799_vm4, %v798_v56, %v797_v7 }
 0x1d7   :  { %v743_v12 = vrot.slane %v742_v1, 1  ;;  %v750_v13 = vrot.slane %v749_v40, 2  ;;  %v764_v2 = vsel %vm699_vm2, %v698_v6, 0.0  ;;  %v831_v14 = vsel %vm799_vm4, %v726_v41, %v830_v38 }
 0x1d8   :  { %v801_v16 = vrot.slane %v782_v61, 5  ;;  %v758_v18 = vadd.f32 %v757_v9, %v756_v35  ;;  %v765_v5 = vadd.f32 %v764_v2, %v763_v4  ;;  %v832_v19 = vsel %vm802_vm5, %v735_v60, %v831_v14 }
 0x1d9   :  { %v744_v20 = vadd.f32 %v743_v12, %v742_v1  ;;  %v751_v22 = vadd.f32 %v750_v13, %v749_v40 }
 0x1da   :  { %v759_v53 = vrot.slane %v758_v18, 2  ;;  %v766_v17 = vrot.slane %v765_v5, 4  ;;  %v803_v0 = vsel %vm802_vm5, %v801_v16, %v800_v63 }
 0x1db   :  { %v752_v58 = vrot.slane %v751_v22, 1  ;;  %v783_v21 = vmul.f32 %v1492_v44, %v744_v20  ;;  %v833_v23 = vsel %vm805_vm6, %v744_v20, %v832_v19 }
 0x1dc   :  { %v760_v59 = vadd.f32 %v759_v53, %v758_v18  ;;  %v767_v54 = vadd.f32 %v766_v17, %v765_v5 }
 0x1dd   :  { %v753_v57 = vadd.f32 %v752_v58, %v751_v22  ;;  %v804_v32 = vrot.slane %v783_v21, 4 }
 0x1de   :  { %v761_v26 = vrot.slane %v760_v59, 1  ;;  %v768_v36 = vrot.slane %v767_v54, 2 }
 0x1df   :  { %v784_v27 = vmul.f32 %v1492_v44, %v753_v57  ;;  %v806_v28 = vsel %vm805_vm6, %v804_v32, %v803_v0  ;;  %v834_v10 = vsel %vm808_vm7, %v753_v57, %v833_v23 }
 0x1e0   :  { %v769_v30 = vadd.f32 %v768_v36, %v767_v54  ;;  %v762_v3 = vadd.f32 %v761_v26, %v760_v59 }
 0x1e1   :  { %v807_v62 = vrot.slane %v784_v27, 3 }
 0x1e2   :  { %v770_v31 = vrot.slane %v769_v30, 1  ;;  %v785_v33 = vmul.f32 %v1492_v44, %v762_v3  ;;  %v835_v34 = vsel %vm811_vm8, %v762_v3, %v834_v10 }
 0x1e3   :  { %v809_v51 = vsel %vm808_vm7, %v807_v62, %v806_v28 }
 0x1e4   :  { %v771_v52 = vadd.f32 %v770_v31, %v769_v30  ;;  %v810_v37 = vrot.slane %v785_v33, 2 }
 0x1e6   :  { %v786_v38 = vmul.f32 %v1492_v44, %v771_v52  ;;  %v812_v41 = vsel %vm811_vm8, %v810_v37, %v809_v51  ;;  %v836_v42 = vsel %vm814_vm9, %v771_v52, %v835_v34 }
 0x1e7   :  { %838 = vst.msk [vmem:[#allocation2] sm:$0xff] %vm699_vm2, %v836_v42 }
 0x1e8   :  { %v813_v43 = vrot.slane %v786_v38, 1 }
 0x1ea   :  { %v815_v8 = vsel %vm814_vm9, %v813_v43, %v812_v41 }
 0x1eb   :  { %v817_v11 = vsel %vm699_vm2, %v815_v8, 0.0 }
 0x1ec   :  { %818 = vadd.xlane.f32.xlu0 %v817_v11 }
 0x1ed   :  { %1111 = shalt.err (!%p1108_p4)
}
 0x1ee   :  { %s1112_s15 = scalar_lea.hbm %s1542_s5, 128 }
 0x1ef   :  { %p1113_p5 = scmp.ne.s32.totalorder %s1542_s5, %s1112_s15  ;;  %p1116_p6 = scmp.lt.u32.totalorder %s1112_s15, %s1542_s5 }
 0x1f1   :  { %p1118_p7 = pnand %p1116_p6, %p1113_p5 }
 0x1f3   :  { %1121 = shalt.err (!%p1118_p7)
}
 0x1f4   :  { %848 = dma.vmem_to_hbm [thread:$0]  %s846_s2, 128, %s1542_s5, [#allocation3]   ;;  %vm820_vm10 = vcmask 7168  }
 0x279   :  { %v819_v44 = vpop.xlane.xlu0 %818 }
 0x27a   :  { %821 = vst.msk [vmem:[%s1543_s6] sm:$0xff] %vm820_vm10, %v819_v44 }
 0x27b   :  { %1122 = dma.done.wait [#allocation3], 128  }
 0x27c   :  { %1123 = vsyncadd [#allocation3], 4294967168 }
 0x27d   :  { %856 = vsyncpa [#allocation3], 1 }

</bundles_post_ra>
